<compile_context>
chip_gen: v6e
topology: v6e:2x2x1
jax: 0.10.0
libtpu: 0.0.40
codegen_flags: <defaults>
</compile_context>

<pallas_src>
import numpy as np
import jax
import jax.numpy as jnp
from jax.experimental import pallas as pl
from jax.experimental.pallas import tpu as pltpu


def _round_up(a, b):
    return (a + b - 1) // b * b


def _vmem_limit_cap_bytes():
    """~75% of per-core VMEM (generation aware); conservative fallback."""
    try:
        cap = int(pltpu.get_tpu_info().vmem_capacity_bytes)
        return (cap * 3) // 4
    except Exception:
        return 48 * 2 ** 20  # 0.75 * v7x's 64 MiB -- safe on every generation


_VMEM_CAP = _vmem_limit_cap_bytes()


# ----------------------------------------------------------------------------
# Faithful numpy ports of torch_dct's dct / idct (norm=None), used only to
# build the (D, D) linear-operator matrices deterministically at setup time.
# ----------------------------------------------------------------------------
def dct_np(x):
    x_shape = x.shape
    N = x_shape[-1]
    x = x.reshape(-1, N)
    v = np.concatenate([x[:, ::2], x[:, 1::2][:, ::-1]], axis=1)
    Vc = np.fft.fft(v, axis=1)
    k = -np.arange(N, dtype=np.float64)[None, :] * np.pi / (2 * N)
    W_r = np.cos(k)
    W_i = np.sin(k)
    V = Vc.real * W_r - Vc.imag * W_i
    V = 2 * V
    return V.reshape(*x_shape)


def idct_np(X):
    x_shape = X.shape
    N = x_shape[-1]
    X_v = X.reshape(-1, N).astype(np.float64) / 2.0
    k = np.arange(N, dtype=np.float64)[None, :] * np.pi / (2 * N)
    W_r = np.cos(k)
    W_i = np.sin(k)
    V_t_r = X_v
    V_t_i = np.concatenate([X_v[:, :1] * 0.0, -X_v[:, ::-1][:, :-1]], axis=1)
    V_r = V_t_r * W_r - V_t_i * W_i
    V_i = V_t_r * W_i + V_t_i * W_r
    V = V_r + 1j * V_i
    v = np.fft.irfft(V, n=N, axis=1)
    x = np.zeros_like(v)
    x[:, ::2] = v[:, : N - N // 2]
    x[:, 1::2] = v[:, ::-1][:, : N // 2]
    return x.reshape(*x_shape)


# ----------------------------------------------------------------------------
# Deterministic random-state construction (mirrors Maskinglayer.__init__ /
# generate_random_state, seeded with numpy instead of torch RNG).
# Setup-time host glue (QR, permutations, DCT matrices) is NOT the hot path.
# ----------------------------------------------------------------------------
def build_masking_params(input_dim, subset_num, seed=0, weight_dtype=jnp.bfloat16):
    rng = np.random.RandomState(seed)

    # random_index -> chunked subsets -> selection_feature / chunk_id
    random_index = rng.permutation(input_dim)
    chunks = np.array_split(random_index, subset_num)
    selection_feature = np.zeros((subset_num, input_dim), dtype=np.float64)
    chunk_id = np.zeros(input_dim, dtype=np.int32)
    for i, ch in enumerate(chunks):
        selection_feature[i, np.sort(ch)] = 1.0
        chunk_id[np.asarray(ch)] = i          # each feature owned by exactly one chunk

    shuffle_index1 = rng.permutation(input_dim)
    shuffle_index2 = rng.permutation(input_dim)

    matrix = rng.randn(input_dim, input_dim)
    q, _ = np.linalg.qr(matrix)
    q = q.copy()
    q[:, -1] = 0.0

    # Linear-operator matrices for the feature dim, row-vector convention.
    D_dct = dct_np(np.eye(input_dim))     # dct(x)  == x @ D_dct
    D_idct = idct_np(np.eye(input_dim))   # idct(x) == x @ D_idct

    # Fold shuffle_index1 into the DCT matrix:  x[:, s1] @ D_dct == x @ A
    A = np.zeros_like(D_dct)
    A[shuffle_index1, :] = D_dct
    # Fold q and shuffle_index2 into the IDCT matrix.
    B = (D_idct @ q)[:, shuffle_index2]

    # bf16 weights: full-rate MXU + half the weight VMEM / HBM traffic; f32
    # accumulation is kept in the kernel (preferred_element_type=f32).
    params = dict(
        A=jnp.asarray(A, weight_dtype),
        B=jnp.asarray(B, weight_dtype),
        chunk_id=jnp.asarray(chunk_id.reshape(1, input_dim), jnp.int32),
    )
    raw = dict(
        selection_feature=selection_feature,
        shuffle_index1=shuffle_index1,
        shuffle_index2=shuffle_index2,
        q=q,
        chunk_id=chunk_id,
        A64=A,
        B64=B,
    )
    return params, raw


# ----------------------------------------------------------------------------
# Pallas kernel: out_tile = ((x_tile @ A) * keep) @ B
# keep[r, d] = (subset[r] == chunk_id[d]) — one compare + one select on the VPU.
# ----------------------------------------------------------------------------
def masking_kernel(subset_ref, chunkid_ref, x_ref, a_ref, b_ref, o_ref):
    # subset_ref:  (TM, 1) int32   per-sample subset id for this batch tile
    # chunkid_ref: (1, D)  int32   subset owning each feature column (resident)
    # x_ref:       (TM, D) bf16    activation tile (streamed)
    # a_ref:       (D, D)  bf16    folded shuffle1 + DCT      (resident)
    # b_ref:       (D, D)  bf16    folded IDCT + q + shuffle2 (resident)
    a = a_ref[...]
    t = jnp.dot(x_ref[...].astype(a.dtype), a,
                preferred_element_type=jnp.float32)            # (TM, D) f32
    keep = subset_ref[...] == chunkid_ref[...]                 # (TM,1)==(1,D) -> (TM,D)
    t = jnp.where(keep, t, 0.0)                                # per-sample channel mask
    b = b_ref[...]
    o_ref[...] = jnp.dot(t.astype(b.dtype), b,
                         preferred_element_type=jnp.float32).astype(o_ref.dtype)


@jax.jit
def masking_forward(x, subset, params):
    """x: (B, D) float32; subset: (B,) int32 per-sample subset index."""
    A = params["A"]
    Bm = params["B"]
    cid = params["chunk_id"]          # (1, D) int32
    Bsz, D = x.shape
    # Note: D should be a multiple of 128 for lane-dense stores (pad A/B/x at
    # setup time if the model ever uses a non-multiple input_dim).

    x_stream = x.astype(A.dtype)      # bf16 stream halves x HBM->VMEM traffic
    x_item = np.dtype(x_stream.dtype).itemsize
    w_item = np.dtype(A.dtype).itemsize

    # Batch tiling: the kernel is HBM/step-overhead bound at small D, so use
    # big tiles (amortize ~0.35us per grid step), but cap at 512 rows so large
    # batches still produce >= 2 grid steps for the v7x megacore to shard.
    sublane = 16 if x_item == 2 else 8
    TM_TARGET = 512
    Bmin = _round_up(max(Bsz, 1), sublane)
    TM = Bmin if Bmin <= TM_TARGET else TM_TARGET
    Bp = _round_up(Bsz, TM)

    if Bp != Bsz:
        x_stream = jnp.pad(x_stream, ((0, Bp - Bsz), (0, 0)))
        subset = jnp.pad(subset, (0, Bp - Bsz))
    subset2d = subset.astype(jnp.int32).reshape(Bp, 1)

    flops = 4 * Bp * D * D                               # two (Bp,D)x(D,D) matmuls
    bytes_accessed = (Bp * D * x_item + Bp * D * 4       # x in (bf16), out (f32)
                      + 2 * D * D * w_item               # A, B
                      + D * 4 + Bp * 4)                  # chunk_id, subset

    # VMEM: resident (double-buffered) bf16 weights + pipelined activation tiles.
    # TODO(synk): for very large D, add pipeline_mode=pl.Buffered(1) on the A/B
    # specs (they never re-DMA) and/or tile the feature dims; unnecessary here.
    vmem_needed = (2 * 2 * D * D * w_item
                   + 2 * TM * D * x_item
                   + 2 * TM * D * 4
                   + 2 * TM * 4 + 2 * D * 4
                   + (2 << 20))
    vmem_limit = int(min(max(vmem_needed, 16 * 2 ** 20), _VMEM_CAP))

    out = pl.pallas_call(
        masking_kernel,
        out_shape=jax.ShapeDtypeStruct((Bp, D), x.dtype),
        grid=(Bp // TM,),
        in_specs=[
            pl.BlockSpec((TM, 1), lambda i: (i, 0)),   # per-sample subset id tile
            pl.BlockSpec((1, D), lambda i: (0, 0)),    # chunk_id (constant -> resident)
            pl.BlockSpec((TM, D), lambda i: (i, 0)),   # x tile (bf16 stream)
            pl.BlockSpec((D, D), lambda i: (0, 0)),    # A (constant -> resident)
            pl.BlockSpec((D, D), lambda i: (0, 0)),    # B (constant -> resident)
        ],
        out_specs=pl.BlockSpec((TM, D), lambda i: (i, 0)),
        compiler_params=pltpu.CompilerParams(
            dimension_semantics=("parallel",),         # megacore-shard the batch
            vmem_limit_bytes=vmem_limit),
        cost_estimate=pl.CostEstimate(flops=flops, transcendentals=0,
                                      bytes_accessed=bytes_accessed),
    )(subset2d, cid, x_stream, A, Bm)
    return out[:Bsz]


# ----------------------------------------------------------------------------
# References for checking.
# ----------------------------------------------------------------------------
def masking_reference(x_np, subset_np, raw):
    """Pure-numpy float64 port of the original (unfolded) torch pipeline."""
    y = x_np[:, raw["shuffle_index1"]]
    Y = dct_np(y)
    Yp = Y * raw["selection_feature"][subset_np]
    z = idct_np(Yp)
    o = z @ raw["q"]
    return o[:, raw["shuffle_index2"]]


def masking_reference_folded_jnp(x, subset, params):
    """Same folded computation as the kernel, expressed in plain jnp/XLA."""
    A = params["A"]
    B = params["B"]
    cid = params["chunk_id"]
    t = jnp.dot(x.astype(A.dtype), A, preferred_element_type=jnp.float32)
    keep = subset.astype(jnp.int32)[:, None] == cid
    t = jnp.where(keep, t, 0.0)
    return jnp.dot(t.astype(B.dtype), B,
                   preferred_element_type=jnp.float32).astype(x.dtype)


if __name__ == "__main__":
    input_dim = 128
    subset_num = 4
    batch = 8

    params, raw = build_masking_params(input_dim, subset_num, seed=0)

    key = jax.random.PRNGKey(0)
    x = jax.random.normal(key, (batch, input_dim), dtype=jnp.float32)
    # Deterministic per-sample subset choice (torch forward would randomize on
    # the host if subset is None; that draw stays outside the kernel).
    subset = jnp.asarray([b % subset_num for b in range(batch)], dtype=jnp.int32)

    out = masking_forward(x, subset, params)
    out = jax.block_until_ready(out)
    out_np = np.asarray(out, np.float64)

    x64 = np.asarray(x, np.float64)
    sub_np = np.asarray(subset)

    # (1) The linear-algebra folding matches the original unfolded pipeline (f64).
    ref64 = masking_reference(x64, sub_np, raw)
    mask64 = (sub_np[:, None] == raw["chunk_id"][None, :]).astype(np.float64)
    folded64 = ((x64 @ raw["A64"]) * mask64) @ raw["B64"]
    np.testing.assert_allclose(folded64, ref64, rtol=1e-6, atol=1e-6)

    # (2) The Pallas kernel matches the same-precision (bf16 weights, f32 acc)
    #     XLA computation.
    ref_xla = jax.block_until_ready(masking_reference_folded_jnp(x, subset, params))
    np.testing.assert_allclose(out_np, np.asarray(ref_xla, np.float64),
                               rtol=5e-3, atol=5e-3)

    # (3) End-to-end sanity vs. the float64 pipeline (bounded bf16 rounding).
    rel_err = np.linalg.norm(out_np - ref64) / np.linalg.norm(ref64)
    assert rel_err < 0.05, f"relative Frobenius error too large: {rel_err}"

    print("KERNEL_OK")
</pallas_src>

<mosaic_0001>
module attributes {stable_mosaic.version = 11 : i64} {
  func.func @masking_kernel(%arg0: i32, %arg1: memref<16x1xi32, #tpu.memory_space<vmem>>, %arg2: memref<1x128xi32, #tpu.memory_space<vmem>>, %arg3: memref<16x128xbf16, #tpu.memory_space<vmem>>, %arg4: memref<128x128xbf16, #tpu.memory_space<vmem>>, %arg5: memref<128x128xbf16, #tpu.memory_space<vmem>>, %arg6: memref<16x128xf32, #tpu.memory_space<vmem>>) attributes {dimension_semantics = [#tpu.dimension_semantics<parallel>], iteration_bounds = array<i64: 1>, scalar_prefetch = 0 : i64, scratch_operands = 0 : i64, tpu.core_type = #tpu.core_type<tc>, window_params = [{transform_indices = @transform_0, window_bounds = array<i64: 16, 1>}, {pipeline_mode = #tpu.pipeline_mode<synchronous>, transform_indices = @transform_1, window_bounds = array<i64: 1, 128>}, {transform_indices = @transform_2, window_bounds = array<i64: 16, 128>}, {pipeline_mode = #tpu.pipeline_mode<synchronous>, transform_indices = @transform_3, window_bounds = array<i64: 128, 128>}, {pipeline_mode = #tpu.pipeline_mode<synchronous>, transform_indices = @transform_4, window_bounds = array<i64: 128, 128>}, {transform_indices = @transform_5, window_bounds = array<i64: 16, 128>}]} {
    %c0 = arith.constant 0 : index
    %c0_0 = arith.constant 0 : index
    %0 = vector.load %arg4[%c0, %c0_0] : memref<128x128xbf16, #tpu.memory_space<vmem>>, vector<128x128xbf16>
    %c0_1 = arith.constant 0 : index
    %c0_2 = arith.constant 0 : index
    %1 = vector.load %arg3[%c0_1, %c0_2] : memref<16x128xbf16, #tpu.memory_space<vmem>>, vector<16x128xbf16>
    %cst = arith.constant dense<0.000000e+00> : vector<16x128xf32>
    %2 = tpu.matmul %1, %0, %cst {dimension_numbers = #tpu.dot_dimension_numbers<[1], [0], [0], [1], [0, 0, 1, 1], [], []>} : vector<16x128xbf16>, vector<128x128xbf16>, vector<16x128xf32> -> vector<16x128xf32>
    %c0_3 = arith.constant 0 : index
    %c0_4 = arith.constant 0 : index
    %3 = vector.load %arg1[%c0_3, %c0_4] : memref<16x1xi32, #tpu.memory_space<vmem>>, vector<16x1xi32>
    %c0_5 = arith.constant 0 : index
    %c0_6 = arith.constant 0 : index
    %4 = vector.load %arg2[%c0_5, %c0_6] : memref<1x128xi32, #tpu.memory_space<vmem>>, vector<1x128xi32>
    %5 = vector.broadcast %3 : vector<16x1xi32> to vector<16x128xi32>
    %6 = vector.broadcast %4 : vector<1x128xi32> to vector<16x128xi32>
    %7 = arith.cmpi eq, %5, %6 : vector<16x128xi32>
    %cst_7 = arith.constant 0.000000e+00 : f32
    %8 = vector.broadcast %cst_7 : f32 to vector<16x128xf32>
    %9 = arith.select %7, %2, %8 : vector<16x128xi1>, vector<16x128xf32>
    %c0_8 = arith.constant 0 : index
    %c0_9 = arith.constant 0 : index
    %10 = vector.load %arg5[%c0_8, %c0_9] : memref<128x128xbf16, #tpu.memory_space<vmem>>, vector<128x128xbf16>
    %11 = arith.truncf %9 : vector<16x128xf32> to vector<16x128xbf16>
    %cst_10 = arith.constant dense<0.000000e+00> : vector<16x128xf32>
    %12 = tpu.matmul %11, %10, %cst_10 {dimension_numbers = #tpu.dot_dimension_numbers<[1], [0], [0], [1], [0, 0, 1, 1], [], []>} : vector<16x128xbf16>, vector<128x128xbf16>, vector<16x128xf32> -> vector<16x128xf32>
    %c0_11 = arith.constant 0 : index
    %c0_12 = arith.constant 0 : index
    %13 = vector.load %arg6[%c0_11, %c0_12] : memref<16x128xf32, #tpu.memory_space<vmem>>, vector<16x128xf32>
    tpu.vector_store %arg6[%c0_11, %c0_12], %12 {strides = array<i32>} : memref<16x128xf32, #tpu.memory_space<vmem>>, vector<16x128xf32>,
    return
  }
  func.func @transform_0(%arg0: i32) -> (i32, i32) {
    %c0_i32 = arith.constant 0 : i32
    %c0_i32_0 = arith.constant 0 : i32
    return %arg0, %c0_i32 : i32, i32
  }
  func.func @transform_1(%arg0: i32) -> (i32, i32) {
    %c0_i32 = arith.constant 0 : i32
    %c0_i32_0 = arith.constant 0 : i32
    %c0_i32_1 = arith.constant 0 : i32
    return %c0_i32, %c0_i32_0 : i32, i32
  }
  func.func @transform_2(%arg0: i32) -> (i32, i32) {
    %c0_i32 = arith.constant 0 : i32
    %c0_i32_0 = arith.constant 0 : i32
    return %arg0, %c0_i32 : i32, i32
  }
  func.func @transform_3(%arg0: i32) -> (i32, i32) {
    %c0_i32 = arith.constant 0 : i32
    %c0_i32_0 = arith.constant 0 : i32
    %c0_i32_1 = arith.constant 0 : i32
    return %c0_i32, %c0_i32_0 : i32, i32
  }
  func.func @transform_4(%arg0: i32) -> (i32, i32) {
    %c0_i32 = arith.constant 0 : i32
    %c0_i32_0 = arith.constant 0 : i32
    %c0_i32_1 = arith.constant 0 : i32
    return %c0_i32, %c0_i32_0 : i32, i32
  }
  func.func @transform_5(%arg0: i32) -> (i32, i32) {
    %c0_i32 = arith.constant 0 : i32
    %c0_i32_0 = arith.constant 0 : i32
    return %arg0, %c0_i32 : i32, i32
  }
}

</mosaic_0001>

<bundles_post_ra>
// kernel: masking_forward.1
= control target key start
LH: loop header
LB: loop body
LE: loop exit
PB: predicated region body
PF: predicated region fallthrough
CT: control target
= control target key end

     0   :  { %10 = vsyncpa [#allocation3], 0  ;;  %s502_s0 = inlined_call_operand.vmem [shape: s32[16,1], index: 0, kind: input, shape index: {}]   ;;  %s503_s1 = inlined_call_operand.vmem [shape: s32[1,128], index: 1, kind: input, shape index: {}]   ;;  %s504_s2 = inlined_call_operand.vmem [shape: bf16[16,128], index: 2, kind: input, shape index: {}]   ;;  %s505_s3 = inlined_call_operand.hbm [shape: bf16[128,128], index: 3, kind: input, shape index: {}]   ;;  %s506_s4 = inlined_call_operand.hbm [shape: bf16[128,128], index: 4, kind: input, shape index: {}]   ;;  %s507_s5 = inlined_call_operand.vmem [shape: f32[16,128], index: 5, kind: output, shape index: {}]  }
   0x1   :  { %11 = vsyncpa [#allocation5], 0  ;;  %s441_s18 = smov [#allocation2]  }
   0x2   :  { %s23_s19 = sshll.u32 %s441_s18, 4  ;;  %s24_s19 = int_to_ptr.vmem [resolvable:$true] %s23_s19 }
   0x3   :  { %s405_s20 = scalar_lea.vmem %s24_s19, 1024  ;;  %p410_p1 = scmp.lt.s32.totalorder %s24_s19, %s24_s19 }
   0x4   :  { %p406_p0 = scmp.ne.s32.totalorder %s24_s19, %s405_s20  ;;  %p411_p2 = scmp.lt.s32.totalorder %s405_s20, %s405_s20 }
   0x6   :  { %p412_p3 = por %p411_p2, %p410_p1 }
   0x8   :  { %p413_p4 = pnand %p412_p3, %p406_p0 }
   0xa   :  { %416 = shalt.err (!%p413_p4)
}
   0xb   :  { %s442_s21 = smov 64   ;;  %s443_s22 = smov 4  }
   0xc   :  { %29 = dma.hbm_to_vmem [thread:$0]  %s505_s3, 1024, %s24_s19, [#allocation3], %s442_s21, %s442_s21, %s443_s22  }
   0xd   :  { %s444_s25 = smov [#allocation4]  }
   0xe   :  { %s35_s26 = sshll.u32 %s444_s25, 4  ;;  %s36_s26 = int_to_ptr.vmem [resolvable:$true] %s35_s26 }
   0xf   :  { %s425_s27 = scalar_lea.vmem %s36_s26, 1024  ;;  %p430_p6 = scmp.lt.s32.totalorder %s36_s26, %s36_s26 }
  0x10   :  { %p426_p5 = scmp.ne.s32.totalorder %s36_s26, %s425_s27  ;;  %p431_p7 = scmp.lt.s32.totalorder %s425_s27, %s425_s27 }
  0x12   :  { %p432_p8 = por %p431_p7, %p430_p6 }
  0x14   :  { %p433_p9 = pnand %p432_p8, %p426_p5 }
  0x16   :  { %436 = shalt.err (!%p433_p9)
}
  0x17   :  { %41 = dma.hbm_to_vmem [thread:$0]  %s506_s4, 1024, %s36_s26, [#allocation5], %s442_s21, %s442_s21, %s443_s22  }
  0x18   :  { %437 = dma.done.wait [#allocation3], 1024  }
  0x19   :  { %438 = vsyncadd [#allocation3], 4294966272 }
  0x1a   :  { %439 = dma.done.wait [#allocation5], 1024  }
  0x1b   :  { %440 = vsyncadd [#allocation5], 4294966272  ;;  %v445_v0 = vmov 0.0   ;;  %vm446_vm0 = vmmov 0   ;;  %v447_v1 = vmov 0   ;;  %v380_v2 = vld [vmem:[#allocation2 + $0x38] sm:$0xff]  }
  0x1c   :  { %332 = vmatprep.subr.bf16.mxu0 %v445_v0  ;;  %348 = vmatprep.mubr.msk.bf16.mxu0 %vm446_vm0, %v445_v0  ;;  %v381_v3 = vld [vmem:[#allocation2 + $0x30] sm:$0xff]   ;;  %v382_v4 = vld [vmem:[#allocation2 + $0x28] sm:$0xff]   ;;  %v383_v5 = vld [vmem:[#allocation2 + $0x20] sm:$0xff]  }
  0x1d   :  { %379 = vset.pattern.permute.xlu0 %v447_v1  ;;  %352 = vmatprep.subr.bf16.mxu1 %v445_v0  ;;  %v162_v6 = vld [vmem:[%s502_s0] sm:$0xff]  ;;  %v389_v7 = vld [vmem:[#allocation4 + $0x38] sm:$0xff]   ;;  %v163_v8 = vld [vmem:[%s502_s0 + $0x8] sm:$0xff] }
  0x1e   :  { %368 = vmatprep.mubr.msk.bf16.mxu1 %vm446_vm0, %v445_v0  ;;  %333 = vmatpush3.bf16.msra.mxu0 %v380_v2  ;;  %v390_v9 = vld [vmem:[#allocation4 + $0x30] sm:$0xff]   ;;  %v384_v10 = vld [vmem:[#allocation2 + $0x18] sm:$0xff]   ;;  %v391_v11 = vld [vmem:[#allocation4 + $0x28] sm:$0xff]  }
  0x1f   :  { %334 = vmatprep.subr.bf16.mxu0 %v445_v0  ;;  %166 = vperm.xlu0 %379, %v162_v6   ;;  %v385_v12 = vld [vmem:[#allocation2 + $0x10] sm:$0xff]   ;;  %v392_v13 = vld [vmem:[#allocation4 + $0x20] sm:$0xff]   ;;  %v386_v14 = vld [vmem:[#allocation2 + $0x8] sm:$0xff]  }
  0x20   :  { %353 = vmatpush3.bf16.msra.mxu1 %v389_v7  ;;  %v393_v15 = vld [vmem:[#allocation4 + $0x18] sm:$0xff]   ;;  %v387_v16 = vld [vmem:[#allocation2] sm:$0xff]   ;;  %v394_v17 = vld [vmem:[#allocation4 + $0x10] sm:$0xff]  }
  0x21   :  { %354 = vmatprep.subr.bf16.mxu1 %v445_v0  ;;  %v388_v18 = vld [vmem:[%s504_s2] sm:$0xff]   ;;  %v395_v19 = vld [vmem:[#allocation4 + $0x8] sm:$0xff]  }
  0x22   :  { %335 = vmatpush3.bf16.msra.mxu0 %v381_v3  ;;  %v396_v20 = vld [vmem:[#allocation4] sm:$0xff]  }
  0x23   :  { %336 = vmatprep.subr.bf16.mxu0 %v445_v0  ;;  %169 = vperm.xlu0 %379, %v163_v8   ;;  %v302_v22 = vld [vmem:[%s503_s1] ss:$0 sm:$0xff] }
  0x24   :  { %355 = vmatpush3.bf16.msra.mxu1 %v390_v9 }
  0x25   :  { %356 = vmatprep.subr.bf16.mxu1 %v445_v0 }
  0x26   :  { %337 = vmatpush3.bf16.msra.mxu0 %v382_v4 }
  0x27   :  { %338 = vmatprep.subr.bf16.mxu0 %v445_v0 }
  0x28   :  { %357 = vmatpush3.bf16.msra.mxu1 %v391_v11 }
  0x29   :  { %358 = vmatprep.subr.bf16.mxu1 %v445_v0 }
  0x2a   :  { %339 = vmatpush3.bf16.msra.mxu0 %v383_v5 }
  0x2b   :  { %340 = vmatprep.subr.bf16.mxu0 %v445_v0 }
  0x2c   :  { %359 = vmatpush3.bf16.msra.mxu1 %v392_v13 }
  0x2d   :  { %360 = vmatprep.subr.bf16.mxu1 %v445_v0 }
  0x2e   :  { %341 = vmatpush3.bf16.msra.mxu0 %v384_v10 }
  0x2f   :  { %342 = vmatprep.subr.bf16.mxu0 %v445_v0 }
  0x30   :  { %361 = vmatpush3.bf16.msra.mxu1 %v393_v15 }
  0x31   :  { %362 = vmatprep.subr.bf16.mxu1 %v445_v0 }
  0x32   :  { %343 = vmatpush3.bf16.msra.mxu0 %v385_v12 }
  0x33   :  { %344 = vmatprep.subr.bf16.mxu0 %v445_v0 }
  0x34   :  { %363 = vmatpush3.bf16.msra.mxu1 %v394_v17 }
  0x35   :  { %364 = vmatprep.subr.bf16.mxu1 %v445_v0 }
  0x36   :  { %345 = vmatpush3.bf16.msra.mxu0 %v386_v14 }
  0x37   :  { %346 = vmatprep.subr.bf16.mxu0 %v445_v0 }
  0x38   :  { %365 = vmatpush3.bf16.msra.mxu1 %v395_v19 }
  0x39   :  { %366 = vmatprep.subr.bf16.mxu1 %v445_v0 }
  0x3a   :  { %347 = vmatpush3.bf16.msra.mxu0 %v387_v16 }
  0x3c   :  { %367 = vmatpush3.bf16.msra.mxu1 %v396_v20 }
  0x3d   :  { %349 = vmatmul.mubr.bf16.vlgmr.msra.gmra.mxu0 %v388_v18 }
  0x9a   :  { %v167_v21 = vpop.permute.xlu0 %166 }
  0x9b   :  { %vm175_vm1 = vcmp.eq.s32.totalorder %v167_v21, %v302_v22 }
  0x9e   :  { %v170_v23 = vpop.permute.xlu0 %169 }
  0x9f   :  { %vm176_vm2 = vcmp.eq.s32.totalorder %v170_v23, %v302_v22 }
  0xa0   :  { %vm311_vm3 = vmpackc.low %vm176_vm2, %vm175_vm1 }
  0xfd   :  { %v155_v24 = vpop.f32.mrf.mxu0 }
  0xff   :  { %v350_v25 = vpop.f32.mrf.mxu0 }
 0x101   :  { %v158_v26 = vpop.f32.mrf.mxu0 }
 0x102   :  { %v312_v27 = vpack.c.bf16 %v158_v26, %v155_v24 }
 0x103   :  { %v351_v28 = vpop.f32.mrf.mxu0 }
 0x104   :  { %369 = vmatmul.mubr.msk.bf16.vlgmr.msra.gmra.mxu1 %vm311_vm3, %v312_v27 }
 0x1c4   :  { %v278_v29 = vpop.f32.mrf.mxu1 }
 0x1c5   :  { %285 = vst [vmem:[%s507_s5] sm:$0xff] %v278_v29 }
 0x1c6   :  { %v370_v30 = vpop.f32.mrf.mxu1 }
 0x1c8   :  { %v281_v31 = vpop.f32.mrf.mxu1 }
 0x1c9   :  { %286 = vst [vmem:[%s507_s5 + $0x8] sm:$0xff] %v281_v31 }
 0x1ca   :  { %v371_v32 = vpop.f32.mrf.mxu1 }
 0x1cb   :  { %291 = vsyncpa [#allocation3], 1 }
 0x1cc   :  { %292 = vsyncpa [#allocation5], 1 }

</bundles_post_ra>
